<compile_context>
chip_gen: v7x
topology: tpu7x:2x2x1
jax: 0.10.0
libtpu: 0.0.40
codegen_flags: <defaults>
</compile_context>

<pallas_src>
import jax
import jax.numpy as jnp
from jax import lax
from jax.experimental import pallas as pl
from jax.experimental.pallas import tpu as pltpu


# ----------------------------------------------------------------------------
# Pallas kernel: whole GRU sequence in one invocation.
# PyTorch GRU semantics per step:
#   r  = sigmoid(x W_ir^T + b_ir + h W_hr^T + b_hr)
#   z  = sigmoid(x W_iz^T + b_iz + h W_hz^T + b_hz)
#   n  = tanh   (x W_in^T + b_in + r * (h W_hn^T + b_hn))
#   h' = (1 - z) * n + z * h
# ----------------------------------------------------------------------------
def encoder_gru_kernel(tok_ref,    # (T,) int32  scalar-prefetch (SMEM)
                       emb_ref,    # (V, H)  bf16 embedding table
                       wi_ref,     # (H, 3H) bf16 [W_ir | W_iz | W_in]
                       bi_ref,     # (1, 3H) f32  [b_ir+b_hr | b_iz+b_hz | b_in]
                       wh_ref,     # (H, 3H) bf16 [W_hr | W_hz | W_hn]
                       bhn_ref,    # (1, H)  f32
                       h0_ref,     # (1, H)  f32  initial hidden
                       out_ref,    # (T, H)  f32  per-step GRU outputs (h_t)
                       gi_tab):    # VMEM (V, 3H) f32 scratch: GI lookup table
    H = wh_ref.shape[0]
    T = out_ref.shape[0]

    # ---- Prologue: batched input projection (one full-width MXU matmul). ----
    # gi_tab[v] = emb[v] @ W_i + b_i   for every vocabulary entry.
    gi_tab[...] = (
        jnp.dot(emb_ref[...], wi_ref[...], preferred_element_type=jnp.float32)
        + bi_ref[...])

    wh = wh_ref[...]      # (H, 3H) bf16, stays in vregs/VMEM across all steps
    bhn = bhn_ref[...]    # (1, H)  f32

    # ---- Recurrence: only h @ W_h remains on the serial path. ----
    def step(t, h):                                   # h: (1, H) f32
        tok = tok_ref[t]
        gi = gi_tab[pl.ds(tok, 1), :]                 # (1, 3H) row gather
        gh = jnp.dot(h.astype(jnp.bfloat16), wh,
                     preferred_element_type=jnp.float32)

        r = jax.nn.sigmoid(gi[:, 0:H] + gh[:, 0:H])
        z = jax.nn.sigmoid(gi[:, H:2 * H] + gh[:, H:2 * H])
        n = jnp.tanh(gi[:, 2 * H:3 * H] + r * (gh[:, 2 * H:3 * H] + bhn))

        h_new = (1.0 - z) * n + z * h                 # f32 blend (v5e-safe)
        out_ref[pl.ds(t, 1), :] = h_new               # VMEM-resident slab
        return h_new

    lax.fori_loop(0, T, step, h0_ref[...])
    # Final hidden state == last row of out_ref; single HBM writeback of the
    # whole (T, H) slab happens once after the kernel body.


def gru_sequence_pallas(tokens, h0, params):
    """tokens: (T,) int32; h0: (1, H) f32 -> per-step outputs (T, H) f32."""
    T = int(tokens.shape[0])
    H = int(params["w_h"].shape[0])
    V = int(params["embedding"].shape[0])
    emb, w_i, w_h = params["embedding"], params["w_i"], params["w_h"]
    b_i, b_hn = params["b_i"], params["b_hn"]

    flops = 2 * V * H * 3 * H + T * 2 * H * 3 * H     # GI table + recurrence
    transcendentals = 3 * T * H                       # 2 sigmoid + 1 tanh / elem
    bytes_accessed = (int(emb.size) + int(w_i.size) + int(w_h.size)) * 2 \
        + (int(b_i.size) + int(b_hn.size) + int(h0.size) + T * H) * 4

    grid_spec = pltpu.PrefetchScalarGridSpec(
        num_scalar_prefetch=1,        # token ids -> SMEM
        grid=(1,),                    # whole sequence in one grid step
        in_specs=[
            pl.BlockSpec((V, H), lambda i, tok: (0, 0)),
            pl.BlockSpec((H, 3 * H), lambda i, tok: (0, 0)),
            pl.BlockSpec((1, 3 * H), lambda i, tok: (0, 0)),
            pl.BlockSpec((H, 3 * H), lambda i, tok: (0, 0)),
            pl.BlockSpec((1, H), lambda i, tok: (0, 0)),
            pl.BlockSpec((1, H), lambda i, tok: (0, 0)),
        ],
        out_specs=pl.BlockSpec((T, H), lambda i, tok: (0, 0)),
        scratch_shapes=[pltpu.VMEM((V, 3 * H), jnp.float32)],
    )

    return pl.pallas_call(
        encoder_gru_kernel,
        out_shape=jax.ShapeDtypeStruct((T, H), jnp.float32),
        grid_spec=grid_spec,
        compiler_params=pltpu.CompilerParams(
            dimension_semantics=("arbitrary",)),      # recurrent, not parallel
        cost_estimate=pl.CostEstimate(flops=flops,
                                      transcendentals=transcendentals,
                                      bytes_accessed=bytes_accessed),
    )(tokens, emb, w_i, b_i, w_h, b_hn, h0)


# ----------------------------------------------------------------------------
# EncoderRNN parameters and forward wrapper.
# ----------------------------------------------------------------------------
def init_encoder_params(key, input_size, hidden_size):
    H = hidden_size
    ks = jax.random.split(key, 13)
    s = 1.0 / jnp.sqrt(H)

    def u(k, shape):
        return jax.random.uniform(k, shape, jnp.float32, -s, s)

    # Embedding table: PyTorch nn.Embedding default init is N(0, 1).
    emb = jax.random.normal(ks[0], (input_size, H), jnp.float32)

    # Per-gate weights stored as (in, out) = transpose of PyTorch's (out, in).
    w_ir, w_iz, w_in = u(ks[1], (H, H)), u(ks[2], (H, H)), u(ks[3], (H, H))
    w_hr, w_hz, w_hn = u(ks[4], (H, H)), u(ks[5], (H, H)), u(ks[6], (H, H))
    b_ir, b_iz, b_in = u(ks[7], (1, H)), u(ks[8], (1, H)), u(ks[9], (1, H))
    b_hr, b_hz, b_hn = u(ks[10], (1, H)), u(ks[11], (1, H)), u(ks[12], (1, H))

    # Fused layouts: W_i = [W_ir|W_iz|W_in], W_h = [W_hr|W_hz|W_hn] (bf16 MXU).
    w_i = jnp.concatenate([w_ir, w_iz, w_in], axis=1).astype(jnp.bfloat16)
    w_h = jnp.concatenate([w_hr, w_hz, w_hn], axis=1).astype(jnp.bfloat16)
    # Fused input-side bias: r/z input+hidden biases folded; the n gate keeps
    # b_in on the input side and b_hn separate (it sits inside r * (...)).
    b_i = jnp.concatenate([b_ir + b_hr, b_iz + b_hz, b_in], axis=1)  # (1, 3H)

    return {"embedding": emb.astype(jnp.bfloat16),
            "w_i": w_i, "w_h": w_h, "b_i": b_i, "b_hn": b_hn}


def encoder_rnn_forward(params, tokens, hidden):
    """tokens: int32 scalar or (T,); hidden: (1, 1, H).
    Returns (output (T, 1, H), hidden (1, 1, H)) — PyTorch EncoderRNN layout.
    With a single token this matches EncoderRNN.forward exactly."""
    tokens = jnp.asarray(tokens, jnp.int32).reshape(-1)
    T = tokens.shape[0]
    H = params["w_h"].shape[0]
    h0 = hidden.reshape(1, H).astype(jnp.float32)
    outputs = gru_sequence_pallas(tokens, h0, params)     # (T, H)
    return outputs.reshape(T, 1, H), outputs[-1].reshape(1, 1, H)


# Pure-JAX reference (same bf16-input / f32-accumulate numerics) for checking.
def encoder_rnn_reference(params, tokens, hidden):
    H = params["w_h"].shape[0]
    h = hidden.reshape(1, H).astype(jnp.float32)
    outs = []
    for t in range(tokens.shape[0]):
        x = params["embedding"][tokens[t]].reshape(1, H)            # bf16
        gi = jnp.dot(x, params["w_i"],
                     preferred_element_type=jnp.float32) + params["b_i"]
        gh = jnp.dot(h.astype(jnp.bfloat16), params["w_h"],
                     preferred_element_type=jnp.float32)
        r = jax.nn.sigmoid(gi[:, 0:H] + gh[:, 0:H])
        z = jax.nn.sigmoid(gi[:, H:2 * H] + gh[:, H:2 * H])
        n = jnp.tanh(gi[:, 2 * H:3 * H] + r * (gh[:, 2 * H:3 * H] + params["b_hn"]))
        h = (1.0 - z) * n + z * h
        outs.append(h)
    out = jnp.concatenate(outs, axis=0)
    return out.reshape(-1, 1, H), h.reshape(1, 1, H)


if __name__ == "__main__":
    input_size = 16     # vocab size
    hidden_size = 128   # small but lane-aligned (module default is 512)
    seq_len = 8

    key = jax.random.PRNGKey(0)
    params = init_encoder_params(key, input_size, hidden_size)
    tokens = jax.random.randint(jax.random.PRNGKey(1), (seq_len,), 0,
                                input_size, dtype=jnp.int32)
    hidden0 = jnp.zeros((1, 1, hidden_size), dtype=jnp.float32)   # initHidden()

    # Single-step call: matches EncoderRNN.forward(input, hidden) semantics.
    out1, hid1 = encoder_rnn_forward(params, tokens[:1], hidden0)
    out1 = jax.block_until_ready(out1)
    hid1 = jax.block_until_ready(hid1)
    assert out1.shape == (1, 1, hidden_size) and hid1.shape == (1, 1, hidden_size)

    # Whole-sequence call: the encoder loop fused inside one pallas_call.
    out, hid = encoder_rnn_forward(params, tokens, hidden0)
    out = jax.block_until_ready(out)
    hid = jax.block_until_ready(hid)
    assert out.shape == (seq_len, 1, hidden_size)
    assert hid.shape == (1, 1, hidden_size)

    ref_out, ref_hid = encoder_rnn_reference(params, tokens, hidden0)
    assert jnp.allclose(out1, ref_out[:1], atol=2e-3, rtol=2e-3), \
        "single-step output mismatch vs reference"
    assert jnp.allclose(out, ref_out, atol=2e-3, rtol=2e-3), \
        "sequence output mismatch vs reference"
    assert jnp.allclose(hid, ref_hid, atol=2e-3, rtol=2e-3), \
        "final hidden mismatch vs reference"

    print("KERNEL_OK")
</pallas_src>

<mosaic_0001>
module attributes {stable_mosaic.version = 11 : i64} {
  func.func @encoder_gru_kernel(%arg0: i32, %arg1: memref<1xi32, #tpu.memory_space<smem>>, %arg2: memref<16x128xbf16, #tpu.memory_space<vmem>>, %arg3: memref<128x384xbf16, #tpu.memory_space<vmem>>, %arg4: memref<1x384xf32, #tpu.memory_space<vmem>>, %arg5: memref<128x384xbf16, #tpu.memory_space<vmem>>, %arg6: memref<1x128xf32, #tpu.memory_space<vmem>>, %arg7: memref<1x128xf32, #tpu.memory_space<vmem>>, %arg8: memref<1x128xf32, #tpu.memory_space<vmem>>, %arg9: memref<16x384xf32, #tpu.memory_space<vmem>>) attributes {dimension_semantics = [#tpu.dimension_semantics<arbitrary>], iteration_bounds = array<i64: 1>, scalar_prefetch = 1 : i64, scratch_operands = 1 : i64, tpu.core_type = #tpu.core_type<tc>, window_params = [{pipeline_mode = #tpu.pipeline_mode<synchronous>, transform_indices = @transform_0, window_bounds = array<i64: 16, 128>}, {pipeline_mode = #tpu.pipeline_mode<synchronous>, transform_indices = @transform_1, window_bounds = array<i64: 128, 384>}, {pipeline_mode = #tpu.pipeline_mode<synchronous>, transform_indices = @transform_2, window_bounds = array<i64: 1, 384>}, {pipeline_mode = #tpu.pipeline_mode<synchronous>, transform_indices = @transform_3, window_bounds = array<i64: 128, 384>}, {pipeline_mode = #tpu.pipeline_mode<synchronous>, transform_indices = @transform_4, window_bounds = array<i64: 1, 128>}, {pipeline_mode = #tpu.pipeline_mode<synchronous>, transform_indices = @transform_5, window_bounds = array<i64: 1, 128>}, {pipeline_mode = #tpu.pipeline_mode<synchronous>, transform_indices = @transform_6, window_bounds = array<i64: 1, 128>}]} {
    %c0 = arith.constant 0 : index
    %c0_0 = arith.constant 0 : index
    %0 = vector.load %arg2[%c0, %c0_0] : memref<16x128xbf16, #tpu.memory_space<vmem>>, vector<16x128xbf16>
    %c0_1 = arith.constant 0 : index
    %c0_2 = arith.constant 0 : index
    %1 = vector.load %arg3[%c0_1, %c0_2] : memref<128x384xbf16, #tpu.memory_space<vmem>>, vector<128x384xbf16>
    %cst = arith.constant dense<0.000000e+00> : vector<16x384xf32>
    %2 = tpu.matmul %0, %1, %cst {dimension_numbers = #tpu.dot_dimension_numbers<[1], [0], [0], [1], [0, 0, 1, 1], [], []>} : vector<16x128xbf16>, vector<128x384xbf16>, vector<16x384xf32> -> vector<16x384xf32>
    %c0_3 = arith.constant 0 : index
    %c0_4 = arith.constant 0 : index
    %3 = vector.load %arg4[%c0_3, %c0_4] : memref<1x384xf32, #tpu.memory_space<vmem>>, vector<1x384xf32>
    %4 = vector.broadcast %3 : vector<1x384xf32> to vector<16x384xf32>
    %5 = arith.addf %2, %4 : vector<16x384xf32>
    %c0_5 = arith.constant 0 : index
    %c0_6 = arith.constant 0 : index
    %6 = vector.load %arg9[%c0_5, %c0_6] : memref<16x384xf32, #tpu.memory_space<vmem>>, vector<16x384xf32>
    tpu.vector_store %arg9[%c0_5, %c0_6], %5 {strides = array<i32>} : memref<16x384xf32, #tpu.memory_space<vmem>>, vector<16x384xf32>,
    %c0_7 = arith.constant 0 : index
    %c0_8 = arith.constant 0 : index
    %7 = vector.load %arg5[%c0_7, %c0_8] : memref<128x384xbf16, #tpu.memory_space<vmem>>, vector<128x384xbf16>
    %c0_9 = arith.constant 0 : index
    %c0_10 = arith.constant 0 : index
    %8 = vector.load %arg6[%c0_9, %c0_10] : memref<1x128xf32, #tpu.memory_space<vmem>>, vector<1x128xf32>
    %c0_11 = arith.constant 0 : index
    %c0_12 = arith.constant 0 : index
    %9 = vector.load %arg7[%c0_11, %c0_12] : memref<1x128xf32, #tpu.memory_space<vmem>>, vector<1x128xf32>
    %c0_i32 = arith.constant 0 : i32
    %10 = arith.index_cast %c0_i32 : i32 to index
    %11 = memref.load %arg1[%10] : memref<1xi32, #tpu.memory_space<smem>>
    %12 = arith.index_cast %11 : i32 to index
    %c0_13 = arith.constant 0 : index
    %13 = vector.load %arg9[%12, %c0_13] : memref<16x384xf32, #tpu.memory_space<vmem>>, vector<1x384xf32>
    %14 = arith.truncf %9 : vector<1x128xf32> to vector<1x128xbf16>
    %cst_14 = arith.constant dense<0.000000e+00> : vector<1x384xf32>
    %15 = tpu.matmul %14, %7, %cst_14 {dimension_numbers = #tpu.dot_dimension_numbers<[1], [0], [0], [1], [0, 0, 1, 1], [], []>} : vector<1x128xbf16>, vector<128x384xbf16>, vector<1x384xf32> -> vector<1x384xf32>
    %16 = vector.extract_strided_slice %13 {offsets = [0, 0], sizes = [1, 128], strides = [1, 1]} : vector<1x384xf32> to vector<1x128xf32>
    %17 = vector.extract_strided_slice %15 {offsets = [0, 0], sizes = [1, 128], strides = [1, 1]} : vector<1x384xf32> to vector<1x128xf32>
    %18 = arith.addf %16, %17 : vector<1x128xf32>
    %19 = arith.negf %18 : vector<1x128xf32>
    %20 = math.exp %19 : vector<1x128xf32>
    %cst_15 = arith.constant 1.000000e+00 : f32
    %21 = vector.broadcast %cst_15 : f32 to vector<1x128xf32>
    %22 = arith.addf %21, %20 : vector<1x128xf32>
    %23 = arith.divf %21, %22 : vector<1x128xf32>
    %24 = vector.extract_strided_slice %13 {offsets = [0, 128], sizes = [1, 128], strides = [1, 1]} : vector<1x384xf32> to vector<1x128xf32>
    %25 = vector.extract_strided_slice %15 {offsets = [0, 128], sizes = [1, 128], strides = [1, 1]} : vector<1x384xf32> to vector<1x128xf32>
    %26 = arith.addf %24, %25 : vector<1x128xf32>
    %27 = arith.negf %26 : vector<1x128xf32>
    %28 = math.exp %27 : vector<1x128xf32>
    %cst_16 = arith.constant 1.000000e+00 : f32
    %29 = vector.broadcast %cst_16 : f32 to vector<1x128xf32>
    %30 = arith.addf %29, %28 : vector<1x128xf32>
    %31 = arith.divf %29, %30 : vector<1x128xf32>
    %32 = vector.extract_strided_slice %13 {offsets = [0, 256], sizes = [1, 128], strides = [1, 1]} : vector<1x384xf32> to vector<1x128xf32>
    %33 = vector.extract_strided_slice %15 {offsets = [0, 256], sizes = [1, 128], strides = [1, 1]} : vector<1x384xf32> to vector<1x128xf32>
    %34 = arith.addf %33, %8 : vector<1x128xf32>
    %35 = arith.mulf %23, %34 : vector<1x128xf32>
    %36 = arith.addf %32, %35 : vector<1x128xf32>
    %37 = math.tanh %36 : vector<1x128xf32>
    %cst_17 = arith.constant 1.000000e+00 : f32
    %38 = vector.broadcast %cst_17 : f32 to vector<1x128xf32>
    %39 = arith.subf %38, %31 : vector<1x128xf32>
    %40 = arith.mulf %39, %37 : vector<1x128xf32>
    %41 = arith.mulf %31, %9 : vector<1x128xf32>
    %42 = arith.addf %40, %41 : vector<1x128xf32>
    %43 = arith.index_cast %c0_i32 : i32 to index
    %c0_18 = arith.constant 0 : index
    %44 = vector.load %arg8[%43, %c0_18] : memref<1x128xf32, #tpu.memory_space<vmem>>, vector<1x128xf32>
    tpu.vector_store %arg8[%43, %c0_18], %42 {strides = array<i32>} : memref<1x128xf32, #tpu.memory_space<vmem>>, vector<1x128xf32>,
    %c1_i32 = arith.constant 1 : i32
    return
  }
  func.func @transform_0(%arg0: i32, %arg1: memref<1xi32, #tpu.memory_space<smem>>) -> (i32, i32) {
    %c0_i32 = arith.constant 0 : i32
    %c0_i32_0 = arith.constant 0 : i32
    %c0_i32_1 = arith.constant 0 : i32
    return %c0_i32, %c0_i32_0 : i32, i32
  }
  func.func @transform_1(%arg0: i32, %arg1: memref<1xi32, #tpu.memory_space<smem>>) -> (i32, i32) {
    %c0_i32 = arith.constant 0 : i32
    %c0_i32_0 = arith.constant 0 : i32
    %c0_i32_1 = arith.constant 0 : i32
    return %c0_i32, %c0_i32_0 : i32, i32
  }
  func.func @transform_2(%arg0: i32, %arg1: memref<1xi32, #tpu.memory_space<smem>>) -> (i32, i32) {
    %c0_i32 = arith.constant 0 : i32
    %c0_i32_0 = arith.constant 0 : i32
    %c0_i32_1 = arith.constant 0 : i32
    return %c0_i32, %c0_i32_0 : i32, i32
  }
  func.func @transform_3(%arg0: i32, %arg1: memref<1xi32, #tpu.memory_space<smem>>) -> (i32, i32) {
    %c0_i32 = arith.constant 0 : i32
    %c0_i32_0 = arith.constant 0 : i32
    %c0_i32_1 = arith.constant 0 : i32
    return %c0_i32, %c0_i32_0 : i32, i32
  }
  func.func @transform_4(%arg0: i32, %arg1: memref<1xi32, #tpu.memory_space<smem>>) -> (i32, i32) {
    %c0_i32 = arith.constant 0 : i32
    %c0_i32_0 = arith.constant 0 : i32
    %c0_i32_1 = arith.constant 0 : i32
    return %c0_i32, %c0_i32_0 : i32, i32
  }
  func.func @transform_5(%arg0: i32, %arg1: memref<1xi32, #tpu.memory_space<smem>>) -> (i32, i32) {
    %c0_i32 = arith.constant 0 : i32
    %c0_i32_0 = arith.constant 0 : i32
    %c0_i32_1 = arith.constant 0 : i32
    return %c0_i32, %c0_i32_0 : i32, i32
  }
  func.func @transform_6(%arg0: i32, %arg1: memref<1xi32, #tpu.memory_space<smem>>) -> (i32, i32) {
    %c0_i32 = arith.constant 0 : i32
    %c0_i32_0 = arith.constant 0 : i32
    %c0_i32_1 = arith.constant 0 : i32
    return %c0_i32, %c0_i32_0 : i32, i32
  }
}

</mosaic_0001>

<bundles_post_ra>
// kernel: tpu_custom_call.1
= control target key start
LH: loop header
LB: loop body
LE: loop exit
PB: predicated region body
PF: predicated region fallthrough
CT: control target
= control target key end

     0   :  { %13 = vsyncpa [#allocation6], 0  ;;  %s1081_s0 = inlined_call_operand.<no memory space> [shape: s32[1], index: 0, kind: input, shape index: {}]   ;;  %s1082_s1 = inlined_call_operand.hbm [shape: bf16[16,128], index: 1, kind: input, shape index: {}]   ;;  %s1083_s2 = inlined_call_operand.hbm [shape: bf16[128,384], index: 2, kind: input, shape index: {}]   ;;  %s1084_s3 = inlined_call_operand.vmem [shape: f32[1,384], index: 3, kind: input, shape index: {}]   ;;  %s1085_s4 = inlined_call_operand.hbm [shape: bf16[128,384], index: 4, kind: input, shape index: {}]   ;;  %s1086_s5 = inlined_call_operand.vmem [shape: f32[1,128], index: 5, kind: input, shape index: {}]   ;;  %s1087_s6 = inlined_call_operand.vmem [shape: f32[1,128], index: 6, kind: input, shape index: {}]   ;;  %s1088_s7 = inlined_call_operand.hbm [shape: f32[1,128], index: 7, kind: output, shape index: {}]  }
   0x1   :  { %14 = vsyncpa [#allocation9], 0 }
   0x2   :  { %15 = vsyncpa [#allocation7], 0  ;;  %s934_s24 = smov [#allocation8]   ;;  %s840_s28 = scalar_lea.hbm %s1083_s2, 3072 }
   0x3   :  { %s33_s25 = sshll.u32 %s934_s24, 4  ;;  %p841_p0 = scmp.ne.s32.totalorder %s1083_s2, %s840_s28  ;;  %s34_s25 = int_to_ptr.vmem [resolvable:$true] %s33_s25 }
   0x4   :  { %p844_p1 = scmp.lt.u32.totalorder %s840_s28, %s1083_s2 }
   0x6   :  { %p846_p2 = pnand %p844_p1, %p841_p0 }
   0x8   :  { %849 = shalt.err (!%p846_p2)
}
   0x9   :  { %s850_s10 = scalar_lea.vmem %s34_s25, 3072  ;;  %p855_p4 = scmp.lt.s32.totalorder %s34_s25, %s34_s25 }
   0xa   :  { %p851_p3 = scmp.ne.s32.totalorder %s34_s25, %s850_s10  ;;  %p856_p5 = scmp.lt.s32.totalorder %s850_s10, %s850_s10 }
   0xc   :  { %p857_p6 = por %p856_p5, %p855_p4 }
   0xe   :  { %p858_p7 = pnand %p857_p6, %p851_p3 }
  0x10   :  { %861 = shalt.err (!%p858_p7)
}
  0x11   :  { %s935_s11 = smov 192   ;;  %s936_s12 = smov 12  }
  0x12   :  { %39 = dma.hbm_to_vmem [thread:$0]  %s1083_s2, 3072, %s34_s25, [#allocation9], %s935_s11, %s935_s11, %s936_s12  }
  0x13   :  { %s937_s15 = smov [#allocation5]   ;;  %s862_s19 = scalar_lea.hbm %s1082_s1, 128 }
  0x14   :  { %s21_s16 = sshll.u32 %s937_s15, 4  ;;  %p863_p8 = scmp.ne.s32.totalorder %s1082_s1, %s862_s19  ;;  %s22_s16 = int_to_ptr.vmem [resolvable:$true] %s21_s16 }
  0x15   :  { %p866_p9 = scmp.lt.u32.totalorder %s862_s19, %s1082_s1 }
  0x17   :  { %p868_p10 = pnand %p866_p9, %p863_p8 }
  0x19   :  { %871 = shalt.err (!%p868_p10)
}
  0x1a   :  { %s872_s24 = scalar_lea.vmem %s22_s16, 128  ;;  %p877_p12 = scmp.lt.s32.totalorder %s22_s16, %s22_s16 }
  0x1b   :  { %p873_p11 = scmp.ne.s32.totalorder %s22_s16, %s872_s24  ;;  %p878_p13 = scmp.lt.s32.totalorder %s872_s24, %s872_s24 }
  0x1d   :  { %p879_p0 = por %p878_p13, %p877_p12 }
  0x1f   :  { %p880_p1 = pnand %p879_p0, %p873_p11 }
  0x21   :  { %883 = shalt.err (!%p880_p1)
}
  0x22   :  { %s938_s2 = smov 64   ;;  %s939_s25 = smov 4  }
  0x23   :  { %27 = dma.hbm_to_vmem [thread:$0]  %s1082_s1, 128, %s22_s16, [#allocation6], %s938_s2, %s938_s2, %s939_s25  }
  0x24   :  { %s940_s28 = smov [#allocation10]   ;;  %s884_s9 = scalar_lea.hbm %s1085_s4, 3072 }
  0x25   :  { %s47_s29 = sshll.u32 %s940_s28, 4  ;;  %p885_p2 = scmp.ne.s32.totalorder %s1085_s4, %s884_s9  ;;  %s48_s29 = int_to_ptr.vmem [resolvable:$true] %s47_s29 }
  0x26   :  { %p888_p3 = scmp.lt.u32.totalorder %s884_s9, %s1085_s4 }
  0x28   :  { %p890_p4 = pnand %p888_p3, %p885_p2 }
  0x2a   :  { %893 = shalt.err (!%p890_p4)
}
  0x2b   :  { %s894_s17 = scalar_lea.vmem %s48_s29, 3072  ;;  %p899_p6 = scmp.lt.s32.totalorder %s48_s29, %s48_s29 }
  0x2c   :  { %p895_p5 = scmp.ne.s32.totalorder %s48_s29, %s894_s17  ;;  %p900_p7 = scmp.lt.s32.totalorder %s894_s17, %s894_s17 }
  0x2e   :  { %p901_p8 = por %p900_p7, %p899_p6 }
  0x30   :  { %p902_p9 = pnand %p901_p8, %p895_p5 }
  0x32   :  { %905 = shalt.err (!%p902_p9)
}
  0x33   :  { %53 = dma.hbm_to_vmem [thread:$0]  %s1085_s4, 3072, %s48_s29, [#allocation9], %s935_s11, %s935_s11, %s936_s12  }
  0x34   :  { %928 = dma.done.wait [#allocation6], 128  }
  0x35   :  { %929 = vsyncadd [#allocation6], 4294967168 }
  0x36   :  { %930 = dma.done.wait [#allocation9], 6144  }
  0x37   :  { %931 = vsyncadd [#allocation9], 4294961152  ;;  %v941_v0 = vmov 0.0   ;;  %v942_v1 = vmov 0   ;;  %vm943_vm0 = vmmov 0   ;;  %v797_v27 = vld [vmem:[#allocation5] sm:$0xff]   ;;  %v104_v53 = vlaneseq }
  0x38   :  { %714 = vmatprep.subr.bf16.mxu1 %v941_v0  ;;  %285 = vmatprep.mubr.bf16.mxu0 %v942_v1  ;;  %v765_v2 = vld [vmem:[#allocation8 + $0x4] ss:$12 sps:$4 sm:$0xff]   ;;  %v767_v3 = vld [vmem:[#allocation8] ss:$12 sps:$4 sm:$0xff]   ;;  %v768_v4 = vld [vmem:[#allocation8 + $0x8] ss:$12 sps:$4 sm:$0xff]  }
  0x39   :  { %730 = vmatprep.mubr.msk.bf16.mxu1 %vm943_vm0, %v941_v0  ;;  %253 = vmatprep.subr.bf16.mxu0 %v765_v2  ;;  %v769_v5 = vld [vmem:[#allocation8 + $0x1c] ss:$12 sps:$4 sm:$0xff]   ;;  %v771_v6 = vld [vmem:[#allocation8 + $0x18] ss:$12 sps:$4 sm:$0xff]   ;;  %v772_v7 = vld [vmem:[#allocation8 + $0x20] ss:$12 sps:$4 sm:$0xff]  }
  0x3a   :  { %254 = vmatpush1.bf16.msra.mxu0 %v767_v3  ;;  %715 = vmatpush3.bf16.msra.mxu1 %v768_v4  ;;  %v773_v8 = vld [vmem:[#allocation8 + $0x34] ss:$12 sps:$4 sm:$0xff]   ;;  %v775_v9 = vld [vmem:[#allocation8 + $0x30] ss:$12 sps:$4 sm:$0xff]   ;;  %v776_v10 = vld [vmem:[#allocation8 + $0x38] ss:$12 sps:$4 sm:$0xff]  }
  0x3b   :  { %255 = vmatprep.subr.bf16.mxu0 %v769_v5  ;;  %716 = vmatprep.subr.bf16.mxu1 %v941_v0  ;;  %v777_v11 = vld [vmem:[#allocation8 + $0x4c] ss:$12 sps:$4 sm:$0xff]   ;;  %v779_v12 = vld [vmem:[#allocation8 + $0x48] ss:$12 sps:$4 sm:$0xff]   ;;  %v780_v13 = vld [vmem:[#allocation8 + $0x50] ss:$12 sps:$4 sm:$0xff]  }
  0x3c   :  { %v781_v14 = vld [vmem:[#allocation8 + $0x64] ss:$12 sps:$4 sm:$0xff]   ;;  %v783_v15 = vld [vmem:[#allocation8 + $0x60] ss:$12 sps:$4 sm:$0xff]   ;;  %v784_v16 = vld [vmem:[#allocation8 + $0x68] ss:$12 sps:$4 sm:$0xff]  }
  0x3d   :  { %v785_v17 = vld [vmem:[#allocation8 + $0x7c] ss:$12 sps:$4 sm:$0xff]   ;;  %v787_v18 = vld [vmem:[#allocation8 + $0x78] ss:$12 sps:$4 sm:$0xff]   ;;  %v788_v19 = vld [vmem:[#allocation8 + $0x80] ss:$12 sps:$4 sm:$0xff]  }
  0x3e   :  { %256 = vmatpush1.bf16.msra.mxu0 %v771_v6  ;;  %717 = vmatpush3.bf16.msra.mxu1 %v772_v7  ;;  %v789_v20 = vld [vmem:[#allocation8 + $0x94] ss:$12 sps:$4 sm:$0xff]   ;;  %v791_v21 = vld [vmem:[#allocation8 + $0x90] ss:$12 sps:$4 sm:$0xff]   ;;  %v792_v22 = vld [vmem:[#allocation8 + $0x98] ss:$12 sps:$4 sm:$0xff]  }
  0x3f   :  { %257 = vmatprep.subr.bf16.mxu0 %v773_v8  ;;  %718 = vmatprep.subr.bf16.mxu1 %v941_v0  ;;  %v793_v23 = vld [vmem:[#allocation8 + $0xac] ss:$12 sps:$4 sm:$0xff]   ;;  %v795_v24 = vld [vmem:[#allocation8 + $0xa8] ss:$12 sps:$4 sm:$0xff]   ;;  %v796_v25 = vld [vmem:[#allocation8 + $0xb0] ss:$12 sps:$4 sm:$0xff]  }
  0x40   :  { %v800_v26 = vld [vmem:[#allocation10 + $0x4] ss:$12 sps:$4 sm:$0xff]   ;;  %v798_v28 = vld [vmem:[#allocation10] ss:$12 sps:$4 sm:$0xff]   ;;  %v803_v29 = vld [vmem:[#allocation10 + $0x1c] ss:$12 sps:$4 sm:$0xff]  }
  0x41   :  { %v819_v30 = vld [vmem:[#allocation10 + $0x8] ss:$12 sps:$4 sm:$0xff]   ;;  %v801_v31 = vld [vmem:[#allocation10 + $0x18] ss:$12 sps:$4 sm:$0xff]   ;;  %v823_v33 = vld [vmem:[#allocation10 + $0x20] ss:$12 sps:$4 sm:$0xff]  }
  0x42   :  { %258 = vmatpush1.bf16.msra.mxu0 %v775_v9  ;;  %719 = vmatpush3.bf16.msra.mxu1 %v776_v10  ;;  %v806_v32 = vld [vmem:[#allocation10 + $0x34] ss:$12 sps:$4 sm:$0xff]   ;;  %v804_v34 = vld [vmem:[#allocation10 + $0x30] ss:$12 sps:$4 sm:$0xff]   ;;  %v809_v35 = vld [vmem:[#allocation10 + $0x4c] ss:$12 sps:$4 sm:$0xff]  }
  0x43   :  { %259 = vmatprep.subr.bf16.mxu0 %v777_v11  ;;  %720 = vmatprep.subr.bf16.mxu1 %v941_v0  ;;  %v824_v36 = vld [vmem:[#allocation10 + $0x38] ss:$12 sps:$4 sm:$0xff]   ;;  %v807_v37 = vld [vmem:[#allocation10 + $0x48] ss:$12 sps:$4 sm:$0xff]   ;;  %v825_v39 = vld [vmem:[#allocation10 + $0x50] ss:$12 sps:$4 sm:$0xff]  }
  0x44   :  { %v812_v38 = vld [vmem:[#allocation10 + $0x64] ss:$12 sps:$4 sm:$0xff]   ;;  %v810_v40 = vld [vmem:[#allocation10 + $0x60] ss:$12 sps:$4 sm:$0xff]   ;;  %v815_v41 = vld [vmem:[#allocation10 + $0x7c] ss:$12 sps:$4 sm:$0xff]  }
  0x45   :  { %v826_v42 = vld [vmem:[#allocation10 + $0x68] ss:$12 sps:$4 sm:$0xff]   ;;  %v813_v43 = vld [vmem:[#allocation10 + $0x78] ss:$12 sps:$4 sm:$0xff]   ;;  %v827_v45 = vld [vmem:[#allocation10 + $0x80] ss:$12 sps:$4 sm:$0xff]  }
  0x46   :  { %260 = vmatpush1.bf16.msra.mxu0 %v779_v12  ;;  %721 = vmatpush3.bf16.msra.mxu1 %v780_v13  ;;  %v818_v44 = vld [vmem:[#allocation10 + $0x94] ss:$12 sps:$4 sm:$0xff]   ;;  %v816_v46 = vld [vmem:[#allocation10 + $0x90] ss:$12 sps:$4 sm:$0xff]   ;;  %v822_v47 = vld [vmem:[#allocation10 + $0xac] ss:$12 sps:$4 sm:$0xff]  }
  0x47   :  { %261 = vmatprep.subr.bf16.mxu0 %v781_v14  ;;  %722 = vmatprep.subr.bf16.mxu1 %v941_v0  ;;  %v828_v48 = vld [vmem:[#allocation10 + $0x98] ss:$12 sps:$4 sm:$0xff]   ;;  %v820_v49 = vld [vmem:[#allocation10 + $0xa8] ss:$12 sps:$4 sm:$0xff]   ;;  %v829_v51 = vld [vmem:[#allocation10 + $0xb0] ss:$12 sps:$4 sm:$0xff]  }
  0x48   :  { %v1051_v50 = vld [vmem:[%s1087_s6] sm:$0x1]  ;;  %v105_v54 = vshrl.u32 %v104_v53, 7  ;;  %s378_s19 = sshra.s32 %s1081_s0, 3  ;;  %s381_s23 = sand.u32 7, %s1081_s0 }
  0x49   :  { %v387_v52 = vpack.c.bf16 %v1051_v50, %v1051_v50  ;;  %v102_v56 = vld [vmem:[%s1084_s3] sm:$0x7]  ;;  %s669_s20 = smul.u32 24, %s378_s19  ;;  %s944_s26 = smov [#allocation11]  }
  0x4a   :  { %262 = vmatpush1.bf16.msra.mxu0 %v783_v15  ;;  %723 = vmatpush3.bf16.msra.mxu1 %v784_v16  ;;  %v106_v55 = vsub.s32 0, %v105_v54  ;;  %v110_v57 = vsub.s32 1, %v105_v54  ;;  %v114_v58 = vsub.s32 2, %v105_v54  ;;  %s631_s27 = sshll.u32 %s944_s26, 4  ;;  %s632_s27 = int_to_ptr.vmem [resolvable:$true] %s631_s27 }
  0x4b   :  { %263 = vmatprep.subr.bf16.mxu0 %v785_v17  ;;  %724 = vmatprep.subr.bf16.mxu1 %v941_v0  ;;  %s384_s24 = sadd.s32 %s669_s20, %s381_s23  ;;  %s910_s28 = scalar_lea.vmem %s632_s27, 32 }
  0x4c   :  { %v107_v59 = vrot.slane %v102_v56, %v106_v55  ;;  %v111_v60 = vrot.slane %v102_v56, %v110_v57  ;;  %v115_v61 = vrot.slane %v102_v56, %v114_v58  ;;  %s385_s2 = scalar_lea.vmem [#allocation2], %s384_s24  ;;  %p911_p11 = scmp.lt.s32.totalorder %s632_s27, %s632_s27 }
  0x4e   :  { %264 = vmatpush1.bf16.msra.mxu0 %v787_v18  ;;  %725 = vmatpush3.bf16.msra.mxu1 %v788_v19 }
  0x4f   :  { %265 = vmatprep.subr.bf16.mxu0 %v789_v20  ;;  %726 = vmatprep.subr.bf16.mxu1 %v941_v0 }
  0x52   :  { %266 = vmatpush1.bf16.msra.mxu0 %v791_v21  ;;  %727 = vmatpush3.bf16.msra.mxu1 %v792_v22 }
  0x53   :  { %267 = vmatprep.subr.bf16.mxu0 %v793_v23  ;;  %728 = vmatprep.subr.bf16.mxu1 %v941_v0 }
  0x56   :  { %268 = vmatpush1.bf16.msra.mxu0 %v795_v24  ;;  %729 = vmatpush3.bf16.msra.mxu1 %v796_v25 }
  0x57   :  { %516 = vmatprep.subr.bf16.mxu0 %v800_v26  ;;  %734 = vmatprep.subr.bf16.mxu1 %v941_v0 }
  0x59   :  { %286 = vmatmul.mubr.bf16.vlgmr.msra.gmra.mrb[0].mxu0 %v797_v27  ;;  %731 = vmatmul.mubr.bf16.vlgmr.msra.gmra.mrb[0].mxu1 %v797_v27 }
  0x5a   :  { %517 = vmatpush1.bf16.msra.mxu0 %v798_v28  ;;  %735 = vmatpush3.bf16.msra.mxu1 %v819_v30 }
  0x5b   :  { %518 = vmatprep.subr.bf16.mxu0 %v803_v29  ;;  %736 = vmatprep.subr.bf16.mxu1 %v941_v0  ;;  %v375_v29 = vld [vmem:[%s1086_s5] sm:$0x1]  ;;  %s906_s5 = scalar_lea.vmem %s632_s27, 16 }
  0x5c   :  { %548 = vmatprep.mubr.bf16.mxu0 %v942_v1  ;;  %750 = vmatprep.mubr.msk.bf16.mxu1 %vm943_vm0, %v941_v0  ;;  %p907_p10 = scmp.ne.s32.totalorder %s632_s27, %s906_s5  ;;  %p912_p12 = scmp.lt.s32.totalorder %s910_s28, %s906_s5 }
  0x5e   :  { %519 = vmatpush1.bf16.msra.mxu0 %v801_v31  ;;  %737 = vmatpush3.bf16.msra.mxu1 %v823_v33  ;;  %p913_p13 = por %p912_p12, %p911_p11 }
  0x5f   :  { %520 = vmatprep.subr.bf16.mxu0 %v806_v32  ;;  %738 = vmatprep.subr.bf16.mxu1 %v941_v0 }
  0x60   :  { %p914_p0 = pnand %p913_p13, %p907_p10 }
  0x62   :  { %521 = vmatpush1.bf16.msra.mxu0 %v804_v34  ;;  %739 = vmatpush3.bf16.msra.mxu1 %v824_v36 }
  0x63   :  { %522 = vmatprep.subr.bf16.mxu0 %v809_v35  ;;  %740 = vmatprep.subr.bf16.mxu1 %v941_v0 }
  0x66   :  { %523 = vmatpush1.bf16.msra.mxu0 %v807_v37  ;;  %741 = vmatpush3.bf16.msra.mxu1 %v825_v39 }
  0x67   :  { %524 = vmatprep.subr.bf16.mxu0 %v812_v38  ;;  %742 = vmatprep.subr.bf16.mxu1 %v941_v0 }
  0x6a   :  { %525 = vmatpush1.bf16.msra.mxu0 %v810_v40  ;;  %743 = vmatpush3.bf16.msra.mxu1 %v826_v42 }
  0x6b   :  { %526 = vmatprep.subr.bf16.mxu0 %v815_v41  ;;  %744 = vmatprep.subr.bf16.mxu1 %v941_v0 }
  0x6e   :  { %527 = vmatpush1.bf16.msra.mxu0 %v813_v43  ;;  %745 = vmatpush3.bf16.msra.mxu1 %v827_v45 }
  0x6f   :  { %528 = vmatprep.subr.bf16.mxu0 %v818_v44  ;;  %746 = vmatprep.subr.bf16.mxu1 %v941_v0 }
  0x72   :  { %529 = vmatpush1.bf16.msra.mxu0 %v816_v46  ;;  %747 = vmatpush3.bf16.msra.mxu1 %v828_v48 }
  0x73   :  { %530 = vmatprep.subr.bf16.mxu0 %v822_v47  ;;  %748 = vmatprep.subr.bf16.mxu1 %v941_v0 }
  0x76   :  { %531 = vmatpush1.bf16.msra.mxu0 %v820_v49  ;;  %749 = vmatpush3.bf16.msra.mxu1 %v829_v51 }
  0x79   :  { %549 = vmatmul.mubr.bf16.vlgmr.msra.gmra.mrb[4].mxu0 %v387_v52  ;;  %751 = vmatmul.mubr.bf16.vlgmr.msra.gmra.mrb[4].mxu1 %v387_v52 }
 0x12c   :  { %v287_v62 = vpop.f32.mrb[0].mxu0  ;;  %v330_v1 = vpop.f32.mrb[0].mxu1 }
 0x12d   :  { %v288_v63 = vadd.f32 %v287_v62, %v107_v59  ;;  %v289_v0 = vpop.f32.mrb[1].mxu0  ;;  %v331_v3 = vadd.f32 %v330_v1, %v115_v61  ;;  %v732_v5 = vpop.f32.mrb[1].mxu1 }
 0x12e   :  { %v290_v2 = vadd.f32 %v289_v0, %v111_v60  ;;  %v291_v4 = vpop.f32.mrb[2].mxu0  ;;  %v333_v8 = vpop.f32.mrb[2].mxu1 }
 0x12f   :  { %337 = vst [vmem:[#allocation2] sm:$0xff] %v288_v63  ;;  %v292_v6 = vadd.f32 %v291_v4, %v107_v59  ;;  %v293_v7 = vpop.f32.mrb[3].mxu0  ;;  %339 = vst [vmem:[#allocation2 + $0x10] sm:$0xff] %v331_v3  ;;  %v334_v10 = vadd.f32 %v333_v8, %v115_v61  ;;  %v733_v11 = vpop.f32.mrb[3].mxu1 }
 0x130   :  { %338 = vst [vmem:[#allocation2 + $0x8] sm:$0xff] %v290_v2  ;;  %v294_v9 = vadd.f32 %v293_v7, %v111_v60 }
 0x131   :  { %340 = vst [vmem:[#allocation2 + $0x18] sm:$0xff] %v292_v6  ;;  %342 = vst [vmem:[#allocation2 + $0x28] sm:$0xff] %v334_v10 }
 0x132   :  { %341 = vst [vmem:[#allocation2 + $0x20] sm:$0xff] %v294_v9 }
 0x139   :  { %v386_v12 = vld [vmem:[%s385_s2] ss:$8 sm:$0x7] }
 0x13a   :  { %v605_v17 = vrot.slane %v386_v12, 1  ;;  %v616_v33 = vrot.slane %v386_v12, 2 }
 0x14c   :  { %v550_v13 = vpop.f32.mrb[4].mxu0  ;;  %v591_v16 = vpop.f32.mrb[4].mxu1 }
 0x14d   :  { %v597_v14 = vadd.f32 %v550_v13, %v386_v12  ;;  %v552_v15 = vpop.f32.mrb[5].mxu0  ;;  %v752_v19 = vpop.f32.mrb[5].mxu1  ;;  %v614_v31 = vadd.f32 %v591_v16, %v375_v29 }
 0x14e   :  { %v554_v18 = vpop.f32.mrb[6].mxu0  ;;  %v594_v22 = vpop.f32.mrb[6].mxu1  ;;  %v607_v23 = vadd.f32 %v605_v17, %v552_v15 }
 0x14f   :  { %v694_v20 = vmul.f32 -1.442695, %v597_v14  ;;  %v555_v21 = vpop.f32.mrb[7].mxu0  ;;  %v753_v24 = vpop.f32.mrb[7].mxu1 }
 0x150   :  { %v695_v25 = vmul.f32 -1.442695, %v607_v23 }
 0x151   :  { %830 = vpow2.f32 %v694_v20 }
 0x152   :  { %832 = vpow2.f32 %v695_v25 }
 0x15b   :  { %v831_v26 = vpop.eup %830 }
 0x15c   :  { %v601_v27 = vadd.f32 1.0, %v831_v26  ;;  %v833_v28 = vpop.eup %832 }
 0x15d   :  { %v611_v30 = vadd.f32 1.0, %v833_v28 }
 0x15e   :  { %834 = vrcp.f32 %v601_v27 }
 0x15f   :  { %836 = vrcp.f32 %v611_v30 }
 0x168   :  { %v835_v32 = vpop.eup %834 }
 0x169   :  { %v615_v34 = vmul.f32 %v835_v32, %v614_v31  ;;  %v837_v36 = vpop.eup %836 }
 0x16a   :  { %v620_v37 = vsub.f32 1.0, %v837_v36  ;;  %v622_v40 = vmul.f32 %v837_v36, %v1051_v50 }
 0x16b   :  { %v618_v35 = vadd.f32 %v616_v33, %v615_v34 }
 0x16d   :  { %838 = vtanh.f32 %v618_v35 }
 0x177   :  { %v839_v38 = vpop.eup %838 }
 0x178   :  { %v621_v39 = vmul.f32 %v839_v38, %v620_v37 }
 0x17a   :  { %v623_v41 = vadd.f32 %v622_v40, %v621_v39 }
 0x17c   :  { %624 = vst [vmem:[#allocation11] sm:$0x1] %v623_v41 }
 0x17d   :  { %917 = shalt.err (!%p914_p0)
}
 0x17e   :  { %s918_s8 = scalar_lea.hbm %s1088_s7, 16 }
 0x17f   :  { %p919_p1 = scmp.ne.s32.totalorder %s1088_s7, %s918_s8  ;;  %p922_p2 = scmp.lt.u32.totalorder %s918_s8, %s1088_s7 }
 0x181   :  { %p924_p3 = pnand %p922_p2, %p919_p1 }
 0x183   :  { %927 = shalt.err (!%p924_p3)
}
 0x184   :  { %634 = dma.vmem_to_hbm [thread:$0]  %s632_s27, 16, %s1088_s7, [#allocation7]  }
 0x185   :  { %932 = dma.done.wait [#allocation7], 16  }
 0x186   :  { %933 = vsyncadd [#allocation7], 4294967280 }
 0x187   :  { %638 = vsyncpa [#allocation6], 1 }
 0x188   :  { %639 = vsyncpa [#allocation9], 1 }
 0x189   :  { %640 = vsyncpa [#allocation7], 1 }

</bundles_post_ra>
